<compile_context>
chip_gen: v7x
topology: tpu7x:2x2x1
jax: 0.10.0
libtpu: 0.0.40
codegen_flags: <defaults>
</compile_context>

<pallas_src>
import functools

import jax
import jax.numpy as jnp
import numpy as np
from jax.experimental import pallas as pl
from jax.experimental.pallas import tpu as pltpu


def _round_up(x, m):
    return ((x + m - 1) // m) * m


def _rnn_relu_block_kernel(x_ref, wih_ref, whh_ref, b_ref, out_ref, h_ref, *, tt):
    """One grid step == TT time steps of the recurrence for one batch block.

    Time-major layout: every per-step slice/store indexes the leading dim only.

    x_ref   : (TT, TB, D)   bf16  input block (time-major)
    wih_ref : (D, Hp)       bf16  W_ih^T        (grid-invariant)
    whh_ref : (Hp, Hp)      bf16  W_hh^T        (grid-invariant)
    b_ref   : (1, Hp)       f32   b_ih + b_hh   (grid-invariant)
    out_ref : (TT, TB, Hp)  f32   hidden states, time-reversed placement
    h_ref   : (TB, Hp)      f32   carried hidden state (persists across time blocks)
    """
    t = pl.program_id(1)

    @pl.when(t == 0)
    def _():  # h_{-1} = 0 at the start of every batch block's time sweep
        h_ref[...] = jnp.zeros_like(h_ref)

    tb = x_ref.shape[1]
    d = x_ref.shape[2]
    hp = whh_ref.shape[1]

    # Hoisted input projection + bias for the whole time block: one MXU GEMM,
    # bias folded in once (no per-step x@W_ih or bias add on the serial path).
    xw = jnp.dot(
        x_ref[...].reshape(tt * tb, d), wih_ref[...],
        preferred_element_type=jnp.float32,
    ) + b_ref[...]
    xw = xw.reshape(tt, tb, hp)                 # (TT, TB, Hp) f32, leading-dim sliceable

    whh = whh_ref[...]                          # (Hp, Hp) bf16, VMEM-resident
    h = h_ref[...]                              # (TB, Hp) f32
    for s in range(tt):                         # fully unrolled serial recurrence
        pre = xw[s] + jnp.dot(
            h.astype(jnp.bfloat16), whh, preferred_element_type=jnp.float32)
        h = jnp.maximum(pre, 0.0)               # nonlin='relu', kept in f32
        # reverse_sequence (full lengths): local step s -> reversed slot TT-1-s.
        # Leading-dim store => full-vreg, unmasked.
        out_ref[tt - 1 - s] = h.astype(out_ref.dtype)
    h_ref[...] = h
    # TODO(synk): for large H, pltpu.matmul_push_rhs could hold W_hh in MXU weight
    # registers across the unrolled steps instead of re-pushing it every dot.


@jax.jit
def rnn_encoder_forward(x_btd, w_ih, w_hh, b_ih, b_hh):
    """x_btd: (B, T, input_dim) -> h_rnn: (B, T, rnn_dim), time-reversed
    (reverse_input=True with full sequence lengths), matching
    nn.RNN(nonlinearity='relu', batch_first=True) followed by reverse_sequence."""
    B, T, D = x_btd.shape
    H = w_ih.shape[0]                     # PyTorch weight_ih_l0 is (H, D)

    TB = min(_round_up(B, 8), 64)         # batch block (sublane-aligned)
    TT = min(_round_up(T, 8), 16)         # time steps per grid step (unrolled)
    Bp = _round_up(B, TB)
    Tp = _round_up(T, TT)
    Hp = _round_up(H, 128)                # lane-aligned hidden dim

    nb_b = Bp // TB
    nb_t = Tp // TT

    # Time-major input for the kernel (cheap: x is D-wide, much smaller than the
    # Hp-wide output).  Zero padding rows/cols are mathematically inert.
    x_tbd = jnp.transpose(x_btd, (1, 0, 2))
    x_p = jnp.pad(x_tbd, ((0, Tp - T), (0, Bp - B), (0, 0))).astype(jnp.bfloat16)
    wih_t = jnp.pad(jnp.transpose(w_ih), ((0, 0), (0, Hp - H))).astype(jnp.bfloat16)
    whh_t = jnp.pad(jnp.transpose(w_hh), ((0, Hp - H), (0, Hp - H))).astype(jnp.bfloat16)
    bias = jnp.pad(b_ih + b_hh, ((0, Hp - H),)).reshape(1, Hp).astype(jnp.float32)

    kernel = functools.partial(_rnn_relu_block_kernel, tt=TT)

    out_p = pl.pallas_call(
        kernel,
        out_shape=jax.ShapeDtypeStruct((Tp, Bp, Hp), jnp.float32),
        grid_spec=pltpu.PrefetchScalarGridSpec(
            num_scalar_prefetch=0,
            grid=(nb_b, nb_t),
            in_specs=[
                pl.BlockSpec((TT, TB, D), lambda b, t: (t, b, 0)),
                pl.BlockSpec((D, Hp), lambda b, t: (0, 0)),    # grid-invariant
                pl.BlockSpec((Hp, Hp), lambda b, t: (0, 0)),   # grid-invariant
                pl.BlockSpec((1, Hp), lambda b, t: (0, 0)),    # grid-invariant
            ],
            # reverse_sequence done for free: time block t -> reversed block slot
            out_specs=pl.BlockSpec((TT, TB, Hp), lambda b, t: (nb_t - 1 - t, b, 0)),
            scratch_shapes=[pltpu.VMEM((TB, Hp), jnp.float32)],
        ),
        compiler_params=pltpu.CompilerParams(
            # time axis is the recurrence -> sequential; batch blocks independent
            dimension_semantics=("parallel", "arbitrary"),
        ),
    )(x_p, wih_t, whh_t, bias)

    # Real step u (0..T-1) lands at reversed padded time position Tp-1-u, i.e. the
    # last T positions of the padded, already-reversed output; padded steps only
    # land in the sliced-off prefix.  Slice first so the (T,B,H)->(B,T,H) transpose
    # only touches real data.
    return jnp.transpose(out_p[Tp - T:, :B, :H], (1, 0, 2))


def _reference_forward(x_btd, w_ih, w_hh, b_ih, b_hh):
    """Pure-JAX reference with the same bf16-MXU-input / f32-accumulation scheme."""
    B, T, D = x_btd.shape
    H = w_ih.shape[0]
    wih_t = jnp.transpose(w_ih).astype(jnp.bfloat16)
    whh_t = jnp.transpose(w_hh).astype(jnp.bfloat16)
    bias = (b_ih + b_hh).astype(jnp.float32)

    def step(h, x_t):
        pre = (
            jnp.dot(x_t.astype(jnp.bfloat16), wih_t, preferred_element_type=jnp.float32)
            + bias
            + jnp.dot(h.astype(jnp.bfloat16), whh_t, preferred_element_type=jnp.float32)
        )
        h_new = jnp.maximum(pre, 0.0)
        return h_new, h_new

    x_tbd = jnp.transpose(x_btd, (1, 0, 2))
    _, hs = jax.lax.scan(step, jnp.zeros((B, H), jnp.float32), x_tbd)
    return jnp.transpose(hs, (1, 0, 2))[:, ::-1, :]   # reverse_input=True


if __name__ == "__main__":
    # Small shapes consistent with the module's forward: x is (B, T, input_dim)
    B, T, input_dim, rnn_dim = 2, 8, 16, 32

    key = jax.random.PRNGKey(0)
    kx, k1, k2, k3, k4 = jax.random.split(key, 5)

    # Deterministic parameter init (PyTorch nn.RNN shapes, uniform(-1/sqrt(H), 1/sqrt(H)))
    bound = 1.0 / np.sqrt(rnn_dim)
    w_ih = jax.random.uniform(k1, (rnn_dim, input_dim), jnp.float32, -bound, bound)
    w_hh = jax.random.uniform(k2, (rnn_dim, rnn_dim), jnp.float32, -bound, bound)
    b_ih = jax.random.uniform(k3, (rnn_dim,), jnp.float32, -bound, bound)
    b_hh = jax.random.uniform(k4, (rnn_dim,), jnp.float32, -bound, bound)

    x = jax.random.normal(kx, (B, T, input_dim), jnp.float32)

    h_rnn = rnn_encoder_forward(x, w_ih, w_hh, b_ih, b_hh)
    jax.block_until_ready(h_rnn)

    h_ref = _reference_forward(x, w_ih, w_hh, b_ih, b_hh)
    np.testing.assert_allclose(np.asarray(h_rnn), np.asarray(h_ref), rtol=2e-3, atol=2e-3)
    assert h_rnn.shape == (B, T, rnn_dim)

    # TODO(synk): dropout between layers (drop_rate>0, n_layer>1), bidirectional and
    # gru/lstm variants are not exercised by the default config and are not implemented.
    print("KERNEL_OK")
</pallas_src>

<mosaic_0001>
module attributes {stable_mosaic.version = 11 : i64} {
  func.func @_rnn_relu_block_kernel(%arg0: i32, %arg1: i32, %arg2: memref<8x8x16xbf16, #tpu.memory_space<vmem>>, %arg3: memref<16x128xbf16, #tpu.memory_space<vmem>>, %arg4: memref<128x128xbf16, #tpu.memory_space<vmem>>, %arg5: memref<1x128xf32, #tpu.memory_space<vmem>>, %arg6: memref<8x8x128xf32, #tpu.memory_space<vmem>>, %arg7: memref<8x128xf32, #tpu.memory_space<vmem>>) attributes {dimension_semantics = [#tpu.dimension_semantics<parallel>, #tpu.dimension_semantics<arbitrary>], iteration_bounds = array<i64: 1, 1>, scalar_prefetch = 0 : i64, scratch_operands = 1 : i64, tpu.core_type = #tpu.core_type<tc>, window_params = [{transform_indices = @transform_0, window_bounds = array<i64: 8, 8, 16>}, {pipeline_mode = #tpu.pipeline_mode<synchronous>, transform_indices = @transform_1, window_bounds = array<i64: 16, 128>}, {pipeline_mode = #tpu.pipeline_mode<synchronous>, transform_indices = @transform_2, window_bounds = array<i64: 128, 128>}, {pipeline_mode = #tpu.pipeline_mode<synchronous>, transform_indices = @transform_3, window_bounds = array<i64: 1, 128>}, {transform_indices = @transform_4, window_bounds = array<i64: 8, 8, 128>}]} {
    %c0_i32 = arith.constant 0 : i32
    %0 = arith.cmpi eq, %arg1, %c0_i32 : i32
    %1 = arith.extui %0 : i1 to i32
    %c0_i32_0 = arith.constant 0 : i32
    %2 = arith.cmpi ne, %1, %c0_i32_0 : i32
    scf.if %2 {
      %cst_46 = arith.constant 0.000000e+00 : f32
      %94 = vector.broadcast %cst_46 : f32 to vector<8x128xf32>
      %c0_47 = arith.constant 0 : index
      %c0_48 = arith.constant 0 : index
      %95 = vector.load %arg7[%c0_47, %c0_48] : memref<8x128xf32, #tpu.memory_space<vmem>>, vector<8x128xf32>
      tpu.vector_store %arg7[%c0_47, %c0_48], %94 {strides = array<i32>} : memref<8x128xf32, #tpu.memory_space<vmem>>, vector<8x128xf32>,
    } else {
    }
    %c0 = arith.constant 0 : index
    %c0_1 = arith.constant 0 : index
    %c0_2 = arith.constant 0 : index
    %3 = vector.load %arg2[%c0, %c0_1, %c0_2] : memref<8x8x16xbf16, #tpu.memory_space<vmem>>, vector<8x8x16xbf16>
    %4 = vector.shape_cast %3 : vector<8x8x16xbf16> to vector<64x16xbf16>
    %c0_3 = arith.constant 0 : index
    %c0_4 = arith.constant 0 : index
    %5 = vector.load %arg3[%c0_3, %c0_4] : memref<16x128xbf16, #tpu.memory_space<vmem>>, vector<16x128xbf16>
    %cst = arith.constant dense<0.000000e+00> : vector<64x128xf32>
    %6 = tpu.matmul %4, %5, %cst {dimension_numbers = #tpu.dot_dimension_numbers<[1], [0], [0], [1], [0, 0, 1, 1], [], []>} : vector<64x16xbf16>, vector<16x128xbf16>, vector<64x128xf32> -> vector<64x128xf32>
    %c0_5 = arith.constant 0 : index
    %c0_6 = arith.constant 0 : index
    %7 = vector.load %arg5[%c0_5, %c0_6] : memref<1x128xf32, #tpu.memory_space<vmem>>, vector<1x128xf32>
    %8 = vector.broadcast %7 : vector<1x128xf32> to vector<64x128xf32>
    %9 = arith.addf %6, %8 : vector<64x128xf32>
    %10 = vector.shape_cast %9 : vector<64x128xf32> to vector<8x8x128xf32>
    %c0_7 = arith.constant 0 : index
    %c0_8 = arith.constant 0 : index
    %11 = vector.load %arg4[%c0_7, %c0_8] : memref<128x128xbf16, #tpu.memory_space<vmem>>, vector<128x128xbf16>
    %c0_9 = arith.constant 0 : index
    %c0_10 = arith.constant 0 : index
    %12 = vector.load %arg7[%c0_9, %c0_10] : memref<8x128xf32, #tpu.memory_space<vmem>>, vector<8x128xf32>
    %13 = vector.extract_strided_slice %10 {offsets = [0, 0, 0], sizes = [1, 8, 128], strides = [1, 1, 1]} : vector<8x8x128xf32> to vector<1x8x128xf32>
    %14 = vector.shape_cast %13 : vector<1x8x128xf32> to vector<8x128xf32>
    %15 = arith.truncf %12 : vector<8x128xf32> to vector<8x128xbf16>
    %cst_11 = arith.constant dense<0.000000e+00> : vector<8x128xf32>
    %16 = tpu.matmul %15, %11, %cst_11 {dimension_numbers = #tpu.dot_dimension_numbers<[1], [0], [0], [1], [0, 0, 1, 1], [], []>} : vector<8x128xbf16>, vector<128x128xbf16>, vector<8x128xf32> -> vector<8x128xf32>
    %17 = arith.addf %14, %16 : vector<8x128xf32>
    %cst_12 = arith.constant 0.000000e+00 : f32
    %18 = vector.broadcast %cst_12 : f32 to vector<8x128xf32>
    %19 = arith.maximumf %17, %18 : vector<8x128xf32>
    %c7 = arith.constant 7 : index
    %c0_13 = arith.constant 0 : index
    %c0_14 = arith.constant 0 : index
    %20 = vector.load %arg6[%c7, %c0_13, %c0_14] : memref<8x8x128xf32, #tpu.memory_space<vmem>>, vector<1x8x128xf32>
    %21 = vector.shape_cast %20 : vector<1x8x128xf32> to vector<8x128xf32>
    %22 = vector.shape_cast %19 : vector<8x128xf32> to vector<1x8x128xf32>
    tpu.vector_store %arg6[%c7, %c0_13, %c0_14], %22 {strides = array<i32>} : memref<8x8x128xf32, #tpu.memory_space<vmem>>, vector<1x8x128xf32>,
    %23 = vector.extract_strided_slice %10 {offsets = [1, 0, 0], sizes = [1, 8, 128], strides = [1, 1, 1]} : vector<8x8x128xf32> to vector<1x8x128xf32>
    %24 = vector.shape_cast %23 : vector<1x8x128xf32> to vector<8x128xf32>
    %25 = arith.truncf %19 : vector<8x128xf32> to vector<8x128xbf16>
    %cst_15 = arith.constant dense<0.000000e+00> : vector<8x128xf32>
    %26 = tpu.matmul %25, %11, %cst_15 {dimension_numbers = #tpu.dot_dimension_numbers<[1], [0], [0], [1], [0, 0, 1, 1], [], []>} : vector<8x128xbf16>, vector<128x128xbf16>, vector<8x128xf32> -> vector<8x128xf32>
    %27 = arith.addf %24, %26 : vector<8x128xf32>
    %cst_16 = arith.constant 0.000000e+00 : f32
    %28 = vector.broadcast %cst_16 : f32 to vector<8x128xf32>
    %29 = arith.maximumf %27, %28 : vector<8x128xf32>
    %c6 = arith.constant 6 : index
    %c0_17 = arith.constant 0 : index
    %c0_18 = arith.constant 0 : index
    %30 = vector.load %arg6[%c6, %c0_17, %c0_18] : memref<8x8x128xf32, #tpu.memory_space<vmem>>, vector<1x8x128xf32>
    %31 = vector.shape_cast %30 : vector<1x8x128xf32> to vector<8x128xf32>
    %32 = vector.shape_cast %29 : vector<8x128xf32> to vector<1x8x128xf32>
    tpu.vector_store %arg6[%c6, %c0_17, %c0_18], %32 {strides = array<i32>} : memref<8x8x128xf32, #tpu.memory_space<vmem>>, vector<1x8x128xf32>,
    %33 = vector.extract_strided_slice %10 {offsets = [2, 0, 0], sizes = [1, 8, 128], strides = [1, 1, 1]} : vector<8x8x128xf32> to vector<1x8x128xf32>
    %34 = vector.shape_cast %33 : vector<1x8x128xf32> to vector<8x128xf32>
    %35 = arith.truncf %29 : vector<8x128xf32> to vector<8x128xbf16>
    %cst_19 = arith.constant dense<0.000000e+00> : vector<8x128xf32>
    %36 = tpu.matmul %35, %11, %cst_19 {dimension_numbers = #tpu.dot_dimension_numbers<[1], [0], [0], [1], [0, 0, 1, 1], [], []>} : vector<8x128xbf16>, vector<128x128xbf16>, vector<8x128xf32> -> vector<8x128xf32>
    %37 = arith.addf %34, %36 : vector<8x128xf32>
    %cst_20 = arith.constant 0.000000e+00 : f32
    %38 = vector.broadcast %cst_20 : f32 to vector<8x128xf32>
    %39 = arith.maximumf %37, %38 : vector<8x128xf32>
    %c5 = arith.constant 5 : index
    %c0_21 = arith.constant 0 : index
    %c0_22 = arith.constant 0 : index
    %40 = vector.load %arg6[%c5, %c0_21, %c0_22] : memref<8x8x128xf32, #tpu.memory_space<vmem>>, vector<1x8x128xf32>
    %41 = vector.shape_cast %40 : vector<1x8x128xf32> to vector<8x128xf32>
    %42 = vector.shape_cast %39 : vector<8x128xf32> to vector<1x8x128xf32>
    tpu.vector_store %arg6[%c5, %c0_21, %c0_22], %42 {strides = array<i32>} : memref<8x8x128xf32, #tpu.memory_space<vmem>>, vector<1x8x128xf32>,
    %43 = vector.extract_strided_slice %10 {offsets = [3, 0, 0], sizes = [1, 8, 128], strides = [1, 1, 1]} : vector<8x8x128xf32> to vector<1x8x128xf32>
    %44 = vector.shape_cast %43 : vector<1x8x128xf32> to vector<8x128xf32>
    %45 = arith.truncf %39 : vector<8x128xf32> to vector<8x128xbf16>
    %cst_23 = arith.constant dense<0.000000e+00> : vector<8x128xf32>
    %46 = tpu.matmul %45, %11, %cst_23 {dimension_numbers = #tpu.dot_dimension_numbers<[1], [0], [0], [1], [0, 0, 1, 1], [], []>} : vector<8x128xbf16>, vector<128x128xbf16>, vector<8x128xf32> -> vector<8x128xf32>
    %47 = arith.addf %44, %46 : vector<8x128xf32>
    %cst_24 = arith.constant 0.000000e+00 : f32
    %48 = vector.broadcast %cst_24 : f32 to vector<8x128xf32>
    %49 = arith.maximumf %47, %48 : vector<8x128xf32>
    %c4 = arith.constant 4 : index
    %c0_25 = arith.constant 0 : index
    %c0_26 = arith.constant 0 : index
    %50 = vector.load %arg6[%c4, %c0_25, %c0_26] : memref<8x8x128xf32, #tpu.memory_space<vmem>>, vector<1x8x128xf32>
    %51 = vector.shape_cast %50 : vector<1x8x128xf32> to vector<8x128xf32>
    %52 = vector.shape_cast %49 : vector<8x128xf32> to vector<1x8x128xf32>
    tpu.vector_store %arg6[%c4, %c0_25, %c0_26], %52 {strides = array<i32>} : memref<8x8x128xf32, #tpu.memory_space<vmem>>, vector<1x8x128xf32>,
    %53 = vector.extract_strided_slice %10 {offsets = [4, 0, 0], sizes = [1, 8, 128], strides = [1, 1, 1]} : vector<8x8x128xf32> to vector<1x8x128xf32>
    %54 = vector.shape_cast %53 : vector<1x8x128xf32> to vector<8x128xf32>
    %55 = arith.truncf %49 : vector<8x128xf32> to vector<8x128xbf16>
    %cst_27 = arith.constant dense<0.000000e+00> : vector<8x128xf32>
    %56 = tpu.matmul %55, %11, %cst_27 {dimension_numbers = #tpu.dot_dimension_numbers<[1], [0], [0], [1], [0, 0, 1, 1], [], []>} : vector<8x128xbf16>, vector<128x128xbf16>, vector<8x128xf32> -> vector<8x128xf32>
    %57 = arith.addf %54, %56 : vector<8x128xf32>
    %cst_28 = arith.constant 0.000000e+00 : f32
    %58 = vector.broadcast %cst_28 : f32 to vector<8x128xf32>
    %59 = arith.maximumf %57, %58 : vector<8x128xf32>
    %c3 = arith.constant 3 : index
    %c0_29 = arith.constant 0 : index
    %c0_30 = arith.constant 0 : index
    %60 = vector.load %arg6[%c3, %c0_29, %c0_30] : memref<8x8x128xf32, #tpu.memory_space<vmem>>, vector<1x8x128xf32>
    %61 = vector.shape_cast %60 : vector<1x8x128xf32> to vector<8x128xf32>
    %62 = vector.shape_cast %59 : vector<8x128xf32> to vector<1x8x128xf32>
    tpu.vector_store %arg6[%c3, %c0_29, %c0_30], %62 {strides = array<i32>} : memref<8x8x128xf32, #tpu.memory_space<vmem>>, vector<1x8x128xf32>,
    %63 = vector.extract_strided_slice %10 {offsets = [5, 0, 0], sizes = [1, 8, 128], strides = [1, 1, 1]} : vector<8x8x128xf32> to vector<1x8x128xf32>
    %64 = vector.shape_cast %63 : vector<1x8x128xf32> to vector<8x128xf32>
    %65 = arith.truncf %59 : vector<8x128xf32> to vector<8x128xbf16>
    %cst_31 = arith.constant dense<0.000000e+00> : vector<8x128xf32>
    %66 = tpu.matmul %65, %11, %cst_31 {dimension_numbers = #tpu.dot_dimension_numbers<[1], [0], [0], [1], [0, 0, 1, 1], [], []>} : vector<8x128xbf16>, vector<128x128xbf16>, vector<8x128xf32> -> vector<8x128xf32>
    %67 = arith.addf %64, %66 : vector<8x128xf32>
    %cst_32 = arith.constant 0.000000e+00 : f32
    %68 = vector.broadcast %cst_32 : f32 to vector<8x128xf32>
    %69 = arith.maximumf %67, %68 : vector<8x128xf32>
    %c2 = arith.constant 2 : index
    %c0_33 = arith.constant 0 : index
    %c0_34 = arith.constant 0 : index
    %70 = vector.load %arg6[%c2, %c0_33, %c0_34] : memref<8x8x128xf32, #tpu.memory_space<vmem>>, vector<1x8x128xf32>
    %71 = vector.shape_cast %70 : vector<1x8x128xf32> to vector<8x128xf32>
    %72 = vector.shape_cast %69 : vector<8x128xf32> to vector<1x8x128xf32>
    tpu.vector_store %arg6[%c2, %c0_33, %c0_34], %72 {strides = array<i32>} : memref<8x8x128xf32, #tpu.memory_space<vmem>>, vector<1x8x128xf32>,
    %73 = vector.extract_strided_slice %10 {offsets = [6, 0, 0], sizes = [1, 8, 128], strides = [1, 1, 1]} : vector<8x8x128xf32> to vector<1x8x128xf32>
    %74 = vector.shape_cast %73 : vector<1x8x128xf32> to vector<8x128xf32>
    %75 = arith.truncf %69 : vector<8x128xf32> to vector<8x128xbf16>
    %cst_35 = arith.constant dense<0.000000e+00> : vector<8x128xf32>
    %76 = tpu.matmul %75, %11, %cst_35 {dimension_numbers = #tpu.dot_dimension_numbers<[1], [0], [0], [1], [0, 0, 1, 1], [], []>} : vector<8x128xbf16>, vector<128x128xbf16>, vector<8x128xf32> -> vector<8x128xf32>
    %77 = arith.addf %74, %76 : vector<8x128xf32>
    %cst_36 = arith.constant 0.000000e+00 : f32
    %78 = vector.broadcast %cst_36 : f32 to vector<8x128xf32>
    %79 = arith.maximumf %77, %78 : vector<8x128xf32>
    %c1 = arith.constant 1 : index
    %c0_37 = arith.constant 0 : index
    %c0_38 = arith.constant 0 : index
    %80 = vector.load %arg6[%c1, %c0_37, %c0_38] : memref<8x8x128xf32, #tpu.memory_space<vmem>>, vector<1x8x128xf32>
    %81 = vector.shape_cast %80 : vector<1x8x128xf32> to vector<8x128xf32>
    %82 = vector.shape_cast %79 : vector<8x128xf32> to vector<1x8x128xf32>
    tpu.vector_store %arg6[%c1, %c0_37, %c0_38], %82 {strides = array<i32>} : memref<8x8x128xf32, #tpu.memory_space<vmem>>, vector<1x8x128xf32>,
    %83 = vector.extract_strided_slice %10 {offsets = [7, 0, 0], sizes = [1, 8, 128], strides = [1, 1, 1]} : vector<8x8x128xf32> to vector<1x8x128xf32>
    %84 = vector.shape_cast %83 : vector<1x8x128xf32> to vector<8x128xf32>
    %85 = arith.truncf %79 : vector<8x128xf32> to vector<8x128xbf16>
    %cst_39 = arith.constant dense<0.000000e+00> : vector<8x128xf32>
    %86 = tpu.matmul %85, %11, %cst_39 {dimension_numbers = #tpu.dot_dimension_numbers<[1], [0], [0], [1], [0, 0, 1, 1], [], []>} : vector<8x128xbf16>, vector<128x128xbf16>, vector<8x128xf32> -> vector<8x128xf32>
    %87 = arith.addf %84, %86 : vector<8x128xf32>
    %cst_40 = arith.constant 0.000000e+00 : f32
    %88 = vector.broadcast %cst_40 : f32 to vector<8x128xf32>
    %89 = arith.maximumf %87, %88 : vector<8x128xf32>
    %c0_41 = arith.constant 0 : index
    %c0_42 = arith.constant 0 : index
    %c0_43 = arith.constant 0 : index
    %90 = vector.load %arg6[%c0_41, %c0_42, %c0_43] : memref<8x8x128xf32, #tpu.memory_space<vmem>>, vector<1x8x128xf32>
    %91 = vector.shape_cast %90 : vector<1x8x128xf32> to vector<8x128xf32>
    %92 = vector.shape_cast %89 : vector<8x128xf32> to vector<1x8x128xf32>
    tpu.vector_store %arg6[%c0_41, %c0_42, %c0_43], %92 {strides = array<i32>} : memref<8x8x128xf32, #tpu.memory_space<vmem>>, vector<1x8x128xf32>,
    %c0_44 = arith.constant 0 : index
    %c0_45 = arith.constant 0 : index
    %93 = vector.load %arg7[%c0_44, %c0_45] : memref<8x128xf32, #tpu.memory_space<vmem>>, vector<8x128xf32>
    tpu.vector_store %arg7[%c0_44, %c0_45], %89 {strides = array<i32>} : memref<8x128xf32, #tpu.memory_space<vmem>>, vector<8x128xf32>,
    return
  }
  func.func @transform_0(%arg0: i32, %arg1: i32) -> (i32, i32, i32) {
    %c0_i32 = arith.constant 0 : i32
    %c0_i32_0 = arith.constant 0 : i32
    return %arg1, %arg0, %c0_i32 : i32, i32, i32
  }
  func.func @transform_1(%arg0: i32, %arg1: i32) -> (i32, i32) {
    %c0_i32 = arith.constant 0 : i32
    %c0_i32_0 = arith.constant 0 : i32
    %c0_i32_1 = arith.constant 0 : i32
    return %c0_i32, %c0_i32_0 : i32, i32
  }
  func.func @transform_2(%arg0: i32, %arg1: i32) -> (i32, i32) {
    %c0_i32 = arith.constant 0 : i32
    %c0_i32_0 = arith.constant 0 : i32
    %c0_i32_1 = arith.constant 0 : i32
    return %c0_i32, %c0_i32_0 : i32, i32
  }
  func.func @transform_3(%arg0: i32, %arg1: i32) -> (i32, i32) {
    %c0_i32 = arith.constant 0 : i32
    %c0_i32_0 = arith.constant 0 : i32
    %c0_i32_1 = arith.constant 0 : i32
    return %c0_i32, %c0_i32_0 : i32, i32
  }
  func.func @transform_4(%arg0: i32, %arg1: i32) -> (i32, i32, i32) {
    %c0_i32 = arith.constant 0 : i32
    %0 = arith.subi %c0_i32, %arg1 : i32
    %c0_i32_0 = arith.constant 0 : i32
    %c0_i32_1 = arith.constant 0 : i32
    return %0, %arg0, %c0_i32_0 : i32, i32, i32
  }
}

</mosaic_0001>

<bundles_post_ra>
// kernel: rnn_encoder_forward.1
= control target key start
LH: loop header
LB: loop body
LE: loop exit
PB: predicated region body
PF: predicated region fallthrough
CT: control target
= control target key end

     0   :  { %v897_v0 = vmov 0.0   ;;  %vm898_vm0 = vmmov 0   ;;  %vm80_vm1 = vcmask 130048   ;;  %v899_v12 = vmov 0.0|0.0   ;;  %s1183_s2 = inlined_call_operand.vmem [shape: bf16[128,128], index: 2, kind: input, shape index: {}]   ;;  %s1184_s1 = inlined_call_operand.vmem [shape: bf16[16,128], index: 1, kind: input, shape index: {}]   ;;  %s1185_s0 = inlined_call_operand.vmem [shape: bf16[8,8,16], index: 0, kind: input, shape index: {}]   ;;  %s1186_s3 = inlined_call_operand.vmem [shape: f32[1,128], index: 3, kind: input, shape index: {}]   ;;  %s1187_s4 = inlined_call_operand.vmem [shape: f32[8,8,128], index: 4, kind: output, shape index: {}]  }
   0x1   :  { %721 = vmatprep.subr.bf16.mxu1 %v897_v0  ;;  %v929_v1 = vld [vmem:[%s1183_s2] sm:$0xff]   ;;  %737 = vmatprep.mubr.msk.bf16.mxu1 %vm898_vm0, %v897_v0  ;;  %v937_v2 = vld [vmem:[%s1183_s2 + $0x8] sm:$0xff]   ;;  %v943_v3 = vld [vmem:[%s1183_s2 + $0x10] sm:$0xff]  }
   0x2   :  { %722 = vmatpush3.bf16.msra.mxu1 %v929_v1  ;;  %v890_v4 = vld [vmem:[%s1184_s1] sm:$0xff]   ;;  %v893_v6 = vld [vmem:[%s1185_s0 + $0x8] sm:$0xff]   ;;  %v961_v7 = vld [vmem:[%s1183_s2 + $0x18] sm:$0xff]  }
   0x3   :  { %723 = vmatprep.subr.bf16.mxu1 %v897_v0  ;;  %v891_v5 = vld [vmem:[%s1185_s0] sm:$0xff]   ;;  %711 = vmatprep.subr.bf16.mxu0 %v890_v4  ;;  %v980_v9 = vld [vmem:[%s1183_s2 + $0x28] sm:$0xff]   ;;  %v989_v10 = vld [vmem:[%s1183_s2 + $0x30] sm:$0xff]  }
   0x4   :  { %712 = vmatpush3.bf16.msra.mxu0 %v890_v4  ;;  %713 = vmatprep.mubr.msk.bf16.mxu0 %vm80_vm1, %v891_v5  ;;  %v971_v8 = vld [vmem:[%s1183_s2 + $0x20] sm:$0xff]   ;;  %v998_v11 = vld [vmem:[%s1183_s2 + $0x38] sm:$0xff]   ;;  %v895_v13 = vld [vmem:[%s1185_s0 + $0x10] sm:$0xff]  }
   0x5   :  { %741 = vmatprep.subr.bf16.mxu0 %v897_v0  ;;  %v896_v14 = vld [vmem:[%s1185_s0 + $0x18] sm:$0xff]   ;;  %v1047_v19 = vld [vmem:[%s1186_s3] ss:$0 sm:$0xff] }
   0x6   :  { %724 = vmatpush3.bf16.msra.mxu1 %v937_v2 }
   0x7   :  { %725 = vmatprep.subr.bf16.mxu1 %v897_v0  ;;  %714 = vmatmul.mubr.msk.bf16.vlgmr.msra.gmra.mrb[0].mxu0 %vm80_vm1, %v893_v6 }
   0x8   :  { %742 = vmatpush3.bf16.msra.mxu0 %v929_v1  ;;  %717 = vmatprep.mubr.msk.bf16.mxu0 %vm80_vm1, %v895_v13 }
   0x9   :  { %743 = vmatprep.subr.bf16.mxu0 %v897_v0 }
   0xa   :  { %726 = vmatpush3.bf16.msra.mxu1 %v943_v3 }
   0xb   :  { %727 = vmatprep.subr.bf16.mxu1 %v897_v0 }
   0xc   :  { %744 = vmatpush3.bf16.msra.mxu0 %v937_v2 }
   0xd   :  { %745 = vmatprep.subr.bf16.mxu0 %v897_v0 }
   0xe   :  { %728 = vmatpush3.bf16.msra.mxu1 %v961_v7 }
   0xf   :  { %729 = vmatprep.subr.bf16.mxu1 %v897_v0  ;;  %718 = vmatmul.mubr.msk.bf16.gmra.mrb[4].mxu0 %vm80_vm1, %v896_v14 }
  0x10   :  { %746 = vmatpush3.bf16.msra.mxu0 %v943_v3  ;;  %757 = vmatprep.mubr.msk.bf16.mxu0 %vm898_vm0, %v897_v0 }
  0x11   :  { %747 = vmatprep.subr.bf16.mxu0 %v897_v0 }
  0x12   :  { %730 = vmatpush3.bf16.msra.mxu1 %v971_v8 }
  0x13   :  { %731 = vmatprep.subr.bf16.mxu1 %v897_v0 }
  0x14   :  { %748 = vmatpush3.bf16.msra.mxu0 %v961_v7 }
  0x15   :  { %749 = vmatprep.subr.bf16.mxu0 %v897_v0 }
  0x16   :  { %732 = vmatpush3.bf16.msra.mxu1 %v980_v9 }
  0x17   :  { %733 = vmatprep.subr.bf16.mxu1 %v897_v0 }
  0x18   :  { %750 = vmatpush3.bf16.msra.mxu0 %v971_v8 }
  0x19   :  { %751 = vmatprep.subr.bf16.mxu0 %v897_v0 }
  0x1a   :  { %734 = vmatpush3.bf16.msra.mxu1 %v989_v10 }
  0x1b   :  { %735 = vmatprep.subr.bf16.mxu1 %v897_v0 }
  0x1c   :  { %752 = vmatpush3.bf16.msra.mxu0 %v980_v9 }
  0x1d   :  { %753 = vmatprep.subr.bf16.mxu0 %v897_v0 }
  0x1e   :  { %736 = vmatpush3.bf16.msra.mxu1 %v998_v11 }
  0x1f   :  { %761 = vmatprep.subr.bf16.mxu1 %v897_v0 }
  0x20   :  { %754 = vmatpush3.bf16.msra.mxu0 %v989_v10 }
  0x21   :  { %738 = vmatmul.mubr.bf16.vlgmr.msra.gmra.mrb[0].mxu1 %v899_v12  ;;  %755 = vmatprep.subr.bf16.mxu0 %v897_v0 }
  0x22   :  { %762 = vmatpush3.bf16.msra.mxu1 %v929_v1  ;;  %777 = vmatprep.mubr.msk.bf16.mxu1 %vm898_vm0, %v897_v0 }
  0x23   :  { %763 = vmatprep.subr.bf16.mxu1 %v897_v0 }
  0x24   :  { %756 = vmatpush3.bf16.msra.mxu0 %v998_v11 }
  0x25   :  { %781 = vmatprep.subr.bf16.mxu0 %v897_v0 }
  0x26   :  { %764 = vmatpush3.bf16.msra.mxu1 %v937_v2 }
  0x27   :  { %765 = vmatprep.subr.bf16.mxu1 %v897_v0 }
  0x2a   :  { %766 = vmatpush3.bf16.msra.mxu1 %v943_v3 }
  0x2b   :  { %767 = vmatprep.subr.bf16.mxu1 %v897_v0 }
  0x2e   :  { %768 = vmatpush3.bf16.msra.mxu1 %v961_v7 }
  0x2f   :  { %769 = vmatprep.subr.bf16.mxu1 %v897_v0 }
  0x32   :  { %770 = vmatpush3.bf16.msra.mxu1 %v971_v8 }
  0x33   :  { %771 = vmatprep.subr.bf16.mxu1 %v897_v0 }
  0x36   :  { %772 = vmatpush3.bf16.msra.mxu1 %v980_v9 }
  0x37   :  { %773 = vmatprep.subr.bf16.mxu1 %v897_v0 }
  0x3a   :  { %774 = vmatpush3.bf16.msra.mxu1 %v989_v10 }
  0x3b   :  { %775 = vmatprep.subr.bf16.mxu1 %v897_v0 }
  0x3e   :  { %776 = vmatpush3.bf16.msra.mxu1 %v998_v11 }
  0x3f   :  { %801 = vmatprep.subr.bf16.mxu1 %v897_v0 }
  0xda   :  { %v1040_v15 = vpop.f32.mrb[0].mxu0 }
  0xdb   :  { %v127_v16 = vpop.f32.mrb[1].mxu0  ;;  %v136_v40 = vadd.f32 %v1040_v15, %v1047_v19 }
  0xdc   :  { %v1042_v17 = vpop.f32.mrb[2].mxu0  ;;  %v128_v20 = vadd.f32 %v1047_v19, %v127_v16 }
  0xdd   :  { %v130_v18 = vpop.f32.mrb[3].mxu0  ;;  %v139_v48 = vadd.f32 %v1042_v17, %v1047_v19 }
  0xde   :  { %v131_v32 = vadd.f32 %v1047_v19, %v130_v18 }
  0xe2   :  { %v1071_v28 = vpop.f32.mrb[4].mxu0 }
  0xe3   :  { %v1073_v29 = vpop.f32.mrb[5].mxu0 }
  0xe4   :  { %v1075_v30 = vpop.f32.mrb[6].mxu0  ;;  %v144_v56 = vadd.f32 %v1047_v19, %v1073_v29 }
  0xe5   :  { %v1077_v31 = vpop.f32.mrb[7].mxu0  ;;  %v155_v16 = vadd.f32 %v1075_v30, %v1047_v19 }
  0xf4   :  { %v258_v21 = vpop.f32.mrb[0].mxu1 }
  0xf5   :  { %v264_v22 = vadd.f32 %v258_v21, %v128_v20  ;;  %v739_v23 = vpop.f32.mrb[1].mxu1 }
  0xf6   :  { %v261_v24 = vpop.f32.mrb[2].mxu1 }
  0xf7   :  { %v265_v25 = vmax.f32 %v264_v22, 0.0  ;;  %v740_v26 = vpop.f32.mrb[3].mxu1 }
  0xf9   :  { %627 = vst [vmem:[%s1187_s4 + $0x38] sm:$0xff] %v265_v25  ;;  %v268_v27 = vpack.c.bf16 %v265_v25, %v265_v25 }
  0xfb   :  { %758 = vmatmul.mubr.bf16.vlgmr.msra.gmra.mrb[8].mxu0 %v268_v27 }
  0xfc   :  { %782 = vmatpush3.bf16.msra.mxu0 %v929_v1  ;;  %797 = vmatprep.mubr.msk.bf16.mxu0 %vm898_vm0, %v897_v0 }
  0xfd   :  { %783 = vmatprep.subr.bf16.mxu0 %v897_v0 }
 0x100   :  { %784 = vmatpush3.bf16.msra.mxu0 %v937_v2 }
 0x101   :  { %785 = vmatprep.subr.bf16.mxu0 %v897_v0 }
 0x104   :  { %786 = vmatpush3.bf16.msra.mxu0 %v943_v3 }
 0x105   :  { %787 = vmatprep.subr.bf16.mxu0 %v897_v0 }
 0x108   :  { %788 = vmatpush3.bf16.msra.mxu0 %v961_v7 }
 0x109   :  { %789 = vmatprep.subr.bf16.mxu0 %v897_v0 }
 0x10c   :  { %790 = vmatpush3.bf16.msra.mxu0 %v971_v8 }
 0x10d   :  { %791 = vmatprep.subr.bf16.mxu0 %v897_v0 }
 0x110   :  { %792 = vmatpush3.bf16.msra.mxu0 %v980_v9 }
 0x111   :  { %793 = vmatprep.subr.bf16.mxu0 %v897_v0 }
 0x114   :  { %794 = vmatpush3.bf16.msra.mxu0 %v989_v10 }
 0x115   :  { %795 = vmatprep.subr.bf16.mxu0 %v897_v0 }
 0x118   :  { %796 = vmatpush3.bf16.msra.mxu0 %v998_v11 }
 0x119   :  { %821 = vmatprep.subr.bf16.mxu0 %v897_v0 }
 0x1ce   :  { %v303_v33 = vpop.f32.mrb[8].mxu0 }
 0x1cf   :  { %v309_v34 = vadd.f32 %v303_v33, %v131_v32  ;;  %v759_v35 = vpop.f32.mrb[9].mxu0 }
 0x1d0   :  { %v306_v36 = vpop.f32.mrb[10].mxu0 }
 0x1d1   :  { %v310_v37 = vmax.f32 %v309_v34, 0.0  ;;  %v760_v38 = vpop.f32.mrb[11].mxu0 }
 0x1d3   :  { %628 = vst [vmem:[%s1187_s4 + $0x30] sm:$0xff] %v310_v37  ;;  %v313_v39 = vpack.c.bf16 %v310_v37, %v310_v37 }
 0x1d5   :  { %778 = vmatmul.mubr.bf16.vlgmr.msra.gmra.mrb[4].mxu1 %v313_v39 }
 0x1d6   :  { %802 = vmatpush3.bf16.msra.mxu1 %v929_v1  ;;  %817 = vmatprep.mubr.msk.bf16.mxu1 %vm898_vm0, %v897_v0 }
 0x1d7   :  { %803 = vmatprep.subr.bf16.mxu1 %v897_v0 }
 0x1da   :  { %804 = vmatpush3.bf16.msra.mxu1 %v937_v2 }
 0x1db   :  { %805 = vmatprep.subr.bf16.mxu1 %v897_v0 }
 0x1de   :  { %806 = vmatpush3.bf16.msra.mxu1 %v943_v3 }
 0x1df   :  { %807 = vmatprep.subr.bf16.mxu1 %v897_v0 }
 0x1e2   :  { %808 = vmatpush3.bf16.msra.mxu1 %v961_v7 }
 0x1e3   :  { %809 = vmatprep.subr.bf16.mxu1 %v897_v0 }
 0x1e6   :  { %810 = vmatpush3.bf16.msra.mxu1 %v971_v8 }
 0x1e7   :  { %811 = vmatprep.subr.bf16.mxu1 %v897_v0 }
 0x1ea   :  { %812 = vmatpush3.bf16.msra.mxu1 %v980_v9 }
 0x1eb   :  { %813 = vmatprep.subr.bf16.mxu1 %v897_v0 }
 0x1ee   :  { %814 = vmatpush3.bf16.msra.mxu1 %v989_v10 }
 0x1ef   :  { %815 = vmatprep.subr.bf16.mxu1 %v897_v0 }
 0x1f2   :  { %816 = vmatpush3.bf16.msra.mxu1 %v998_v11 }
 0x1f3   :  { %841 = vmatprep.subr.bf16.mxu1 %v897_v0 }
 0x2a8   :  { %v348_v41 = vpop.f32.mrb[4].mxu1 }
 0x2a9   :  { %v354_v42 = vadd.f32 %v348_v41, %v136_v40  ;;  %v779_v43 = vpop.f32.mrb[5].mxu1 }
 0x2aa   :  { %v351_v44 = vpop.f32.mrb[6].mxu1 }
 0x2ab   :  { %v355_v45 = vmax.f32 %v354_v42, 0.0  ;;  %v780_v46 = vpop.f32.mrb[7].mxu1 }
 0x2ad   :  { %629 = vst [vmem:[%s1187_s4 + $0x28] sm:$0xff] %v355_v45  ;;  %v358_v47 = vpack.c.bf16 %v355_v45, %v355_v45 }
 0x2af   :  { %798 = vmatmul.mubr.bf16.vlgmr.msra.gmra.mrb[12].mxu0 %v358_v47 }
 0x2b0   :  { %822 = vmatpush3.bf16.msra.mxu0 %v929_v1  ;;  %837 = vmatprep.mubr.msk.bf16.mxu0 %vm898_vm0, %v897_v0 }
 0x2b1   :  { %823 = vmatprep.subr.bf16.mxu0 %v897_v0 }
 0x2b4   :  { %824 = vmatpush3.bf16.msra.mxu0 %v937_v2 }
 0x2b5   :  { %825 = vmatprep.subr.bf16.mxu0 %v897_v0 }
 0x2b8   :  { %826 = vmatpush3.bf16.msra.mxu0 %v943_v3 }
 0x2b9   :  { %827 = vmatprep.subr.bf16.mxu0 %v897_v0 }
 0x2bc   :  { %828 = vmatpush3.bf16.msra.mxu0 %v961_v7 }
 0x2bd   :  { %829 = vmatprep.subr.bf16.mxu0 %v897_v0 }
 0x2c0   :  { %830 = vmatpush3.bf16.msra.mxu0 %v971_v8 }
 0x2c1   :  { %831 = vmatprep.subr.bf16.mxu0 %v897_v0 }
 0x2c4   :  { %832 = vmatpush3.bf16.msra.mxu0 %v980_v9 }
 0x2c5   :  { %833 = vmatprep.subr.bf16.mxu0 %v897_v0 }
 0x2c8   :  { %834 = vmatpush3.bf16.msra.mxu0 %v989_v10 }
 0x2c9   :  { %835 = vmatprep.subr.bf16.mxu0 %v897_v0 }
 0x2cc   :  { %836 = vmatpush3.bf16.msra.mxu0 %v998_v11 }
 0x2cd   :  { %861 = vmatprep.subr.bf16.mxu0 %v897_v0 }
 0x382   :  { %v393_v49 = vpop.f32.mrb[12].mxu0 }
 0x383   :  { %v399_v50 = vadd.f32 %v393_v49, %v139_v48  ;;  %v799_v51 = vpop.f32.mrb[13].mxu0 }
 0x384   :  { %v396_v52 = vpop.f32.mrb[14].mxu0 }
 0x385   :  { %v400_v53 = vmax.f32 %v399_v50, 0.0  ;;  %v800_v54 = vpop.f32.mrb[15].mxu0 }
 0x387   :  { %630 = vst [vmem:[%s1187_s4 + $0x20] sm:$0xff] %v400_v53  ;;  %v403_v55 = vpack.c.bf16 %v400_v53, %v400_v53 }
 0x389   :  { %818 = vmatmul.mubr.bf16.vlgmr.msra.gmra.mrb[8].mxu1 %v403_v55 }
 0x38a   :  { %842 = vmatpush3.bf16.msra.mxu1 %v929_v1  ;;  %857 = vmatprep.mubr.msk.bf16.mxu1 %vm898_vm0, %v897_v0 }
 0x38b   :  { %843 = vmatprep.subr.bf16.mxu1 %v897_v0 }
 0x38e   :  { %844 = vmatpush3.bf16.msra.mxu1 %v937_v2 }
 0x38f   :  { %845 = vmatprep.subr.bf16.mxu1 %v897_v0 }
 0x392   :  { %846 = vmatpush3.bf16.msra.mxu1 %v943_v3 }
 0x393   :  { %847 = vmatprep.subr.bf16.mxu1 %v897_v0 }
 0x396   :  { %848 = vmatpush3.bf16.msra.mxu1 %v961_v7 }
 0x397   :  { %849 = vmatprep.subr.bf16.mxu1 %v897_v0 }
 0x39a   :  { %850 = vmatpush3.bf16.msra.mxu1 %v971_v8 }
 0x39b   :  { %851 = vmatprep.subr.bf16.mxu1 %v897_v0 }
 0x39e   :  { %852 = vmatpush3.bf16.msra.mxu1 %v980_v9 }
 0x39f   :  { %853 = vmatprep.subr.bf16.mxu1 %v897_v0 }
 0x3a2   :  { %854 = vmatpush3.bf16.msra.mxu1 %v989_v10 }
 0x3a3   :  { %855 = vmatprep.subr.bf16.mxu1 %v897_v0 }
 0x3a6   :  { %856 = vmatpush3.bf16.msra.mxu1 %v998_v11 }
 0x45c   :  { %v438_v57 = vpop.f32.mrb[8].mxu1 }
 0x45d   :  { %v444_v58 = vadd.f32 %v438_v57, %v144_v56  ;;  %v819_v59 = vpop.f32.mrb[9].mxu1 }
 0x45e   :  { %v441_v60 = vpop.f32.mrb[10].mxu1 }
 0x45f   :  { %v445_v61 = vmax.f32 %v444_v58, 0.0  ;;  %v820_v62 = vpop.f32.mrb[11].mxu1 }
 0x461   :  { %631 = vst [vmem:[%s1187_s4 + $0x18] sm:$0xff] %v445_v61  ;;  %v448_v63 = vpack.c.bf16 %v445_v61, %v445_v61 }
 0x463   :  { %838 = vmatmul.mubr.bf16.vlgmr.msra.gmra.mrb[16].mxu0 %v448_v63 }
 0x464   :  { %862 = vmatpush3.bf16.msra.mxu0 %v929_v1  ;;  %877 = vmatprep.mubr.msk.bf16.mxu0 %vm898_vm0, %v897_v0  ;;  %v147_v1 = vadd.f32 %v1047_v19, %v1077_v31 }
 0x465   :  { %863 = vmatprep.subr.bf16.mxu0 %v897_v0 }
 0x468   :  { %864 = vmatpush3.bf16.msra.mxu0 %v937_v2 }
 0x469   :  { %865 = vmatprep.subr.bf16.mxu0 %v897_v0 }
 0x46c   :  { %866 = vmatpush3.bf16.msra.mxu0 %v943_v3 }
 0x46d   :  { %867 = vmatprep.subr.bf16.mxu0 %v897_v0 }
 0x470   :  { %868 = vmatpush3.bf16.msra.mxu0 %v961_v7 }
 0x471   :  { %869 = vmatprep.subr.bf16.mxu0 %v897_v0 }
 0x474   :  { %870 = vmatpush3.bf16.msra.mxu0 %v971_v8 }
 0x475   :  { %871 = vmatprep.subr.bf16.mxu0 %v897_v0 }
 0x478   :  { %872 = vmatpush3.bf16.msra.mxu0 %v980_v9 }
 0x479   :  { %873 = vmatprep.subr.bf16.mxu0 %v897_v0 }
 0x47c   :  { %874 = vmatpush3.bf16.msra.mxu0 %v989_v10 }
 0x47d   :  { %875 = vmatprep.subr.bf16.mxu0 %v897_v0  ;;  %v152_v0 = vadd.f32 %v1071_v28, %v1047_v19 }
 0x480   :  { %876 = vmatpush3.bf16.msra.mxu0 %v998_v11 }
 0x536   :  { %v483_v2 = vpop.f32.mrb[16].mxu0 }
 0x537   :  { %v489_v3 = vadd.f32 %v483_v2, %v147_v1  ;;  %v839_v4 = vpop.f32.mrb[17].mxu0 }
 0x538   :  { %v486_v5 = vpop.f32.mrb[18].mxu0 }
 0x539   :  { %v490_v6 = vmax.f32 %v489_v3, 0.0  ;;  %v840_v7 = vpop.f32.mrb[19].mxu0 }
 0x53b   :  { %632 = vst [vmem:[%s1187_s4 + $0x10] sm:$0xff] %v490_v6  ;;  %v493_v8 = vpack.c.bf16 %v490_v6, %v490_v6 }
 0x53d   :  { %858 = vmatmul.mubr.bf16.vlgmr.msra.gmra.mrb[12].mxu1 %v493_v8 }
 0x610   :  { %v528_v9 = vpop.f32.mrb[12].mxu1 }
 0x611   :  { %v534_v10 = vadd.f32 %v528_v9, %v152_v0  ;;  %v859_v11 = vpop.f32.mrb[13].mxu1 }
 0x612   :  { %v531_v12 = vpop.f32.mrb[14].mxu1 }
 0x613   :  { %v535_v13 = vmax.f32 %v534_v10, 0.0  ;;  %v860_v14 = vpop.f32.mrb[15].mxu1 }
 0x615   :  { %633 = vst [vmem:[%s1187_s4 + $0x8] sm:$0xff] %v535_v13  ;;  %v538_v15 = vpack.c.bf16 %v535_v13, %v535_v13 }
 0x617   :  { %878 = vmatmul.mubr.bf16.vlgmr.msra.gmra.mrb[20].mxu0 %v538_v15 }
 0x6ea   :  { %v573_v17 = vpop.f32.mrb[20].mxu0 }
 0x6eb   :  { %v579_v18 = vadd.f32 %v573_v17, %v155_v16  ;;  %v879_v20 = vpop.f32.mrb[21].mxu0 }
 0x6ec   :  { %v576_v21 = vpop.f32.mrb[22].mxu0 }
 0x6ed   :  { %v580_v22 = vmax.f32 %v579_v18, 0.0  ;;  %v880_v23 = vpop.f32.mrb[23].mxu0 }
 0x6ef   :  { %581 = vst [vmem:[%s1187_s4] sm:$0xff] %v580_v22 }

</bundles_post_ra>
